<compile_context>
chip_gen: v6e
topology: v6e:2x2x1
jax: 0.10.0
libtpu: 0.0.40
codegen_flags: <defaults>
</compile_context>

<pallas_src>
import functools

import numpy as np
import jax
import jax.numpy as jnp
from jax.experimental import pallas as pl
from jax.experimental.pallas import tpu as pltpu

N_FFT = 400
HOP = 160


def _windowed_dft_bases(n_fft, n_freq, f_pad):
    """Periodic-Hann-windowed real/imag DFT bases; freq axis zero-padded to f_pad."""
    n = np.arange(n_fft, dtype=np.float64)[:, None]                  # (n_fft, 1)
    k = np.arange(f_pad, dtype=np.float64)[None, :]                  # (1, f_pad)
    win = 0.5 - 0.5 * np.cos(2.0 * np.pi * n / n_fft)                # torch.hann_window (periodic)
    ang = 2.0 * np.pi * n * k / n_fft
    keep = (k < n_freq).astype(np.float64)
    bcos = (win * np.cos(ang) * keep).astype(np.float32)             # Re basis, window folded in
    bsin = (-win * np.sin(ang) * keep).astype(np.float32)            # Im basis, window folded in
    return jnp.asarray(bcos), jnp.asarray(bsin)


# ----------------------------------------------------------------------------- kernel
def spectrogram_kernel(x_ref, bcos_ref, bsin_ref, o_ref, frames_ref, *, hop):
    """Fused STFT power spectrogram for one batch element.
    x_ref:      (1, 1, T_pad)  reflect-padded waveform.
    bcos/bsin:  (n_fft, F_PAD) windowed DFT bases (VMEM-resident constants).
    o_ref:      (1, n_frames, F_PAD) power spectrogram (freq zero-padded to F_PAD).
    frames_ref: VMEM scratch (n_frames, n_fft)."""
    n_frames, n_fft = frames_ref.shape

    # Frame extraction entirely in VMEM (static slices; hop/window fixed at trace time).
    for t in range(n_frames):
        frames_ref[pl.ds(t, 1), :] = x_ref[0, :, pl.ds(t * hop, n_fft)]

    fr = frames_ref[...]                                             # (n_frames, n_fft)
    re = jnp.dot(fr, bcos_ref[...], preferred_element_type=jnp.float32)
    im = jnp.dot(fr, bsin_ref[...], preferred_element_type=jnp.float32)
    o_ref[...] = (re * re + im * im)[None, :, :].astype(o_ref.dtype)  # power = 2.0


# ----------------------------------------------------------------------------- wrapper
def dsp_front_end(x, *, n_fft=N_FFT, hop=HOP):
    """torchaudio.transforms.Spectrogram(n_fft, hop_length=hop) forward.
    x: (batch, time) float32 waveform.
    returns: (batch, n_fft//2 + 1, n_frames) power spectrogram."""
    B, T = x.shape
    n_freq = n_fft // 2 + 1
    f_pad = ((n_freq + 127) // 128) * 128                            # lane-dense store width (256)
    pad = n_fft // 2

    # TODO(synk): reflect (center) padding is a tiny 1-D jnp.pad in the wrapper; an
    # in-kernel equivalent would need gather-style reversed indexing and isn't worth it.
    xp = jnp.pad(x, ((0, 0), (pad, pad)), mode="reflect")
    t_pad = T + 2 * pad
    n_frames = (t_pad - n_fft) // hop + 1
    xp = xp.reshape(B, 1, t_pad)                                     # keep last-two-dims blockable

    bcos, bsin = _windowed_dft_bases(n_fft, n_freq, f_pad)

    out = pl.pallas_call(
        functools.partial(spectrogram_kernel, hop=hop),
        out_shape=jax.ShapeDtypeStruct((B, n_frames, f_pad), jnp.float32),
        grid=(B,),
        in_specs=[
            pl.BlockSpec((1, 1, t_pad), lambda b: (b, 0, 0)),
            pl.BlockSpec((n_fft, f_pad), lambda b: (0, 0)),
            pl.BlockSpec((n_fft, f_pad), lambda b: (0, 0)),
        ],
        out_specs=pl.BlockSpec((1, n_frames, f_pad), lambda b: (b, 0, 0)),
        scratch_shapes=[pltpu.VMEM((n_frames, n_fft), jnp.float32)],
        compiler_params=pltpu.CompilerParams(dimension_semantics=("parallel",)),
    )(xp, bcos, bsin)

    # Drop zero-padded frequency bins; go to torchaudio's (..., freq, time) layout.
    return jnp.transpose(out[:, :, :n_freq], (0, 2, 1))


# ----------------------------------------------------------------------------- reference
def _reference(x, n_fft=N_FFT, hop=HOP):
    """Pure-JAX reference of the same Spectrogram semantics (no Pallas)."""
    pad = n_fft // 2
    xp = jnp.pad(x, ((0, 0), (pad, pad)), mode="reflect")
    n_frames = (xp.shape[1] - n_fft) // hop + 1
    idx = jnp.arange(n_frames)[:, None] * hop + jnp.arange(n_fft)[None, :]
    frames = xp[:, idx]                                              # (B, n_frames, n_fft)
    n_freq = n_fft // 2 + 1
    bc, bs = _windowed_dft_bases(n_fft, n_freq, n_freq)              # (n_fft, n_freq)
    re = jnp.einsum("btn,nk->btk", frames, bc)
    im = jnp.einsum("btn,nk->btk", frames, bs)
    return jnp.transpose(re * re + im * im, (0, 2, 1))               # (B, n_freq, n_frames)


if __name__ == "__main__":
    key = jax.random.PRNGKey(0)
    x = jax.random.normal(key, (2, 1600), jnp.float32)               # (batch, time) waveform

    fwd = jax.jit(dsp_front_end)
    out = jax.block_until_ready(fwd(x))

    n_frames = 1 + x.shape[1] // HOP                                 # center=True framing
    assert out.shape == (2, N_FFT // 2 + 1, n_frames), out.shape
    assert bool(jnp.all(jnp.isfinite(out)))

    ref = _reference(x)
    rel_err = float(jnp.max(jnp.abs(out - ref)) / (jnp.max(jnp.abs(ref)) + 1e-6))
    assert rel_err < 2e-2, rel_err

    print("KERNEL_OK")
</pallas_src>

<mosaic_0001>
module attributes {stable_mosaic.version = 11 : i64} {
  func.func @spectrogram_kernel(%arg0: i32, %arg1: memref<1x1x2000xf32, #tpu.memory_space<vmem>>, %arg2: memref<400x256xf32, #tpu.memory_space<vmem>>, %arg3: memref<400x256xf32, #tpu.memory_space<vmem>>, %arg4: memref<1x11x256xf32, #tpu.memory_space<vmem>>, %arg5: memref<11x400xf32, #tpu.memory_space<vmem>>) attributes {dimension_semantics = [#tpu.dimension_semantics<parallel>], iteration_bounds = array<i64: 2>, scalar_prefetch = 0 : i64, scratch_operands = 1 : i64, tpu.core_type = #tpu.core_type<tc>, window_params = [{transform_indices = @transform_0, window_bounds = array<i64: 1, 1, 2000>}, {pipeline_mode = #tpu.pipeline_mode<synchronous>, transform_indices = @transform_1, window_bounds = array<i64: 400, 256>}, {pipeline_mode = #tpu.pipeline_mode<synchronous>, transform_indices = @transform_2, window_bounds = array<i64: 400, 256>}, {transform_indices = @transform_3, window_bounds = array<i64: 1, 11, 256>}]} {
    %c0 = arith.constant 0 : index
    %c0_0 = arith.constant 0 : index
    %c0_1 = arith.constant 0 : index
    %0 = vector.load %arg1[%c0, %c0_0, %c0_1] : memref<1x1x2000xf32, #tpu.memory_space<vmem>>, vector<1x1x400xf32>
    %1 = vector.shape_cast %0 : vector<1x1x400xf32> to vector<1x400xf32>
    %c0_2 = arith.constant 0 : index
    %c0_3 = arith.constant 0 : index
    %2 = vector.load %arg5[%c0_2, %c0_3] : memref<11x400xf32, #tpu.memory_space<vmem>>, vector<1x400xf32>
    tpu.vector_store %arg5[%c0_2, %c0_3], %1 {strides = array<i32>} : memref<11x400xf32, #tpu.memory_space<vmem>>, vector<1x400xf32>,
    %c0_4 = arith.constant 0 : index
    %c0_5 = arith.constant 0 : index
    %c160 = arith.constant 160 : index
    %3 = vector.load %arg1[%c0_4, %c0_5, %c160] : memref<1x1x2000xf32, #tpu.memory_space<vmem>>, vector<1x1x400xf32>
    %4 = vector.shape_cast %3 : vector<1x1x400xf32> to vector<1x400xf32>
    %c1 = arith.constant 1 : index
    %c0_6 = arith.constant 0 : index
    %5 = vector.load %arg5[%c1, %c0_6] : memref<11x400xf32, #tpu.memory_space<vmem>>, vector<1x400xf32>
    tpu.vector_store %arg5[%c1, %c0_6], %4 {strides = array<i32>} : memref<11x400xf32, #tpu.memory_space<vmem>>, vector<1x400xf32>,
    %c0_7 = arith.constant 0 : index
    %c0_8 = arith.constant 0 : index
    %c320 = arith.constant 320 : index
    %6 = vector.load %arg1[%c0_7, %c0_8, %c320] : memref<1x1x2000xf32, #tpu.memory_space<vmem>>, vector<1x1x400xf32>
    %7 = vector.shape_cast %6 : vector<1x1x400xf32> to vector<1x400xf32>
    %c2 = arith.constant 2 : index
    %c0_9 = arith.constant 0 : index
    %8 = vector.load %arg5[%c2, %c0_9] : memref<11x400xf32, #tpu.memory_space<vmem>>, vector<1x400xf32>
    tpu.vector_store %arg5[%c2, %c0_9], %7 {strides = array<i32>} : memref<11x400xf32, #tpu.memory_space<vmem>>, vector<1x400xf32>,
    %c0_10 = arith.constant 0 : index
    %c0_11 = arith.constant 0 : index
    %c480 = arith.constant 480 : index
    %9 = vector.load %arg1[%c0_10, %c0_11, %c480] : memref<1x1x2000xf32, #tpu.memory_space<vmem>>, vector<1x1x400xf32>
    %10 = vector.shape_cast %9 : vector<1x1x400xf32> to vector<1x400xf32>
    %c3 = arith.constant 3 : index
    %c0_12 = arith.constant 0 : index
    %11 = vector.load %arg5[%c3, %c0_12] : memref<11x400xf32, #tpu.memory_space<vmem>>, vector<1x400xf32>
    tpu.vector_store %arg5[%c3, %c0_12], %10 {strides = array<i32>} : memref<11x400xf32, #tpu.memory_space<vmem>>, vector<1x400xf32>,
    %c0_13 = arith.constant 0 : index
    %c0_14 = arith.constant 0 : index
    %c640 = arith.constant 640 : index
    %12 = vector.load %arg1[%c0_13, %c0_14, %c640] : memref<1x1x2000xf32, #tpu.memory_space<vmem>>, vector<1x1x400xf32>
    %13 = vector.shape_cast %12 : vector<1x1x400xf32> to vector<1x400xf32>
    %c4 = arith.constant 4 : index
    %c0_15 = arith.constant 0 : index
    %14 = vector.load %arg5[%c4, %c0_15] : memref<11x400xf32, #tpu.memory_space<vmem>>, vector<1x400xf32>
    tpu.vector_store %arg5[%c4, %c0_15], %13 {strides = array<i32>} : memref<11x400xf32, #tpu.memory_space<vmem>>, vector<1x400xf32>,
    %c0_16 = arith.constant 0 : index
    %c0_17 = arith.constant 0 : index
    %c800 = arith.constant 800 : index
    %15 = vector.load %arg1[%c0_16, %c0_17, %c800] : memref<1x1x2000xf32, #tpu.memory_space<vmem>>, vector<1x1x400xf32>
    %16 = vector.shape_cast %15 : vector<1x1x400xf32> to vector<1x400xf32>
    %c5 = arith.constant 5 : index
    %c0_18 = arith.constant 0 : index
    %17 = vector.load %arg5[%c5, %c0_18] : memref<11x400xf32, #tpu.memory_space<vmem>>, vector<1x400xf32>
    tpu.vector_store %arg5[%c5, %c0_18], %16 {strides = array<i32>} : memref<11x400xf32, #tpu.memory_space<vmem>>, vector<1x400xf32>,
    %c0_19 = arith.constant 0 : index
    %c0_20 = arith.constant 0 : index
    %c960 = arith.constant 960 : index
    %18 = vector.load %arg1[%c0_19, %c0_20, %c960] : memref<1x1x2000xf32, #tpu.memory_space<vmem>>, vector<1x1x400xf32>
    %19 = vector.shape_cast %18 : vector<1x1x400xf32> to vector<1x400xf32>
    %c6 = arith.constant 6 : index
    %c0_21 = arith.constant 0 : index
    %20 = vector.load %arg5[%c6, %c0_21] : memref<11x400xf32, #tpu.memory_space<vmem>>, vector<1x400xf32>
    tpu.vector_store %arg5[%c6, %c0_21], %19 {strides = array<i32>} : memref<11x400xf32, #tpu.memory_space<vmem>>, vector<1x400xf32>,
    %c0_22 = arith.constant 0 : index
    %c0_23 = arith.constant 0 : index
    %c1120 = arith.constant 1120 : index
    %21 = vector.load %arg1[%c0_22, %c0_23, %c1120] : memref<1x1x2000xf32, #tpu.memory_space<vmem>>, vector<1x1x400xf32>
    %22 = vector.shape_cast %21 : vector<1x1x400xf32> to vector<1x400xf32>
    %c7 = arith.constant 7 : index
    %c0_24 = arith.constant 0 : index
    %23 = vector.load %arg5[%c7, %c0_24] : memref<11x400xf32, #tpu.memory_space<vmem>>, vector<1x400xf32>
    tpu.vector_store %arg5[%c7, %c0_24], %22 {strides = array<i32>} : memref<11x400xf32, #tpu.memory_space<vmem>>, vector<1x400xf32>,
    %c0_25 = arith.constant 0 : index
    %c0_26 = arith.constant 0 : index
    %c1280 = arith.constant 1280 : index
    %24 = vector.load %arg1[%c0_25, %c0_26, %c1280] : memref<1x1x2000xf32, #tpu.memory_space<vmem>>, vector<1x1x400xf32>
    %25 = vector.shape_cast %24 : vector<1x1x400xf32> to vector<1x400xf32>
    %c8 = arith.constant 8 : index
    %c0_27 = arith.constant 0 : index
    %26 = vector.load %arg5[%c8, %c0_27] : memref<11x400xf32, #tpu.memory_space<vmem>>, vector<1x400xf32>
    tpu.vector_store %arg5[%c8, %c0_27], %25 {strides = array<i32>} : memref<11x400xf32, #tpu.memory_space<vmem>>, vector<1x400xf32>,
    %c0_28 = arith.constant 0 : index
    %c0_29 = arith.constant 0 : index
    %c1440 = arith.constant 1440 : index
    %27 = vector.load %arg1[%c0_28, %c0_29, %c1440] : memref<1x1x2000xf32, #tpu.memory_space<vmem>>, vector<1x1x400xf32>
    %28 = vector.shape_cast %27 : vector<1x1x400xf32> to vector<1x400xf32>
    %c9 = arith.constant 9 : index
    %c0_30 = arith.constant 0 : index
    %29 = vector.load %arg5[%c9, %c0_30] : memref<11x400xf32, #tpu.memory_space<vmem>>, vector<1x400xf32>
    tpu.vector_store %arg5[%c9, %c0_30], %28 {strides = array<i32>} : memref<11x400xf32, #tpu.memory_space<vmem>>, vector<1x400xf32>,
    %c0_31 = arith.constant 0 : index
    %c0_32 = arith.constant 0 : index
    %c1600 = arith.constant 1600 : index
    %30 = vector.load %arg1[%c0_31, %c0_32, %c1600] : memref<1x1x2000xf32, #tpu.memory_space<vmem>>, vector<1x1x400xf32>
    %31 = vector.shape_cast %30 : vector<1x1x400xf32> to vector<1x400xf32>
    %c10 = arith.constant 10 : index
    %c0_33 = arith.constant 0 : index
    %32 = vector.load %arg5[%c10, %c0_33] : memref<11x400xf32, #tpu.memory_space<vmem>>, vector<1x400xf32>
    tpu.vector_store %arg5[%c10, %c0_33], %31 {strides = array<i32>} : memref<11x400xf32, #tpu.memory_space<vmem>>, vector<1x400xf32>,
    %c0_34 = arith.constant 0 : index
    %c0_35 = arith.constant 0 : index
    %33 = vector.load %arg5[%c0_34, %c0_35] : memref<11x400xf32, #tpu.memory_space<vmem>>, vector<11x400xf32>
    %c0_36 = arith.constant 0 : index
    %c0_37 = arith.constant 0 : index
    %34 = vector.load %arg2[%c0_36, %c0_37] : memref<400x256xf32, #tpu.memory_space<vmem>>, vector<400x256xf32>
    %cst = arith.constant dense<0.000000e+00> : vector<11x256xf32>
    %35 = tpu.matmul %33, %34, %cst {dimension_numbers = #tpu.dot_dimension_numbers<[1], [0], [0], [1], [0, 0, 1, 1], [], []>} : vector<11x400xf32>, vector<400x256xf32>, vector<11x256xf32> -> vector<11x256xf32>
    %c0_38 = arith.constant 0 : index
    %c0_39 = arith.constant 0 : index
    %36 = vector.load %arg3[%c0_38, %c0_39] : memref<400x256xf32, #tpu.memory_space<vmem>>, vector<400x256xf32>
    %cst_40 = arith.constant dense<0.000000e+00> : vector<11x256xf32>
    %37 = tpu.matmul %33, %36, %cst_40 {dimension_numbers = #tpu.dot_dimension_numbers<[1], [0], [0], [1], [0, 0, 1, 1], [], []>} : vector<11x400xf32>, vector<400x256xf32>, vector<11x256xf32> -> vector<11x256xf32>
    %38 = arith.mulf %35, %35 : vector<11x256xf32>
    %39 = arith.mulf %37, %37 : vector<11x256xf32>
    %40 = arith.addf %38, %39 : vector<11x256xf32>
    %41 = vector.shape_cast %40 : vector<11x256xf32> to vector<1x11x256xf32>
    %c0_41 = arith.constant 0 : index
    %c0_42 = arith.constant 0 : index
    %c0_43 = arith.constant 0 : index
    %42 = vector.load %arg4[%c0_41, %c0_42, %c0_43] : memref<1x11x256xf32, #tpu.memory_space<vmem>>, vector<1x11x256xf32>
    tpu.vector_store %arg4[%c0_41, %c0_42, %c0_43], %41 {strides = array<i32>} : memref<1x11x256xf32, #tpu.memory_space<vmem>>, vector<1x11x256xf32>,
    return
  }
  func.func @transform_0(%arg0: i32) -> (i32, i32, i32) {
    %c0_i32 = arith.constant 0 : i32
    %c0_i32_0 = arith.constant 0 : i32
    %c0_i32_1 = arith.constant 0 : i32
    return %arg0, %c0_i32, %c0_i32_0 : i32, i32, i32
  }
  func.func @transform_1(%arg0: i32) -> (i32, i32) {
    %c0_i32 = arith.constant 0 : i32
    %c0_i32_0 = arith.constant 0 : i32
    %c0_i32_1 = arith.constant 0 : i32
    return %c0_i32, %c0_i32_0 : i32, i32
  }
  func.func @transform_2(%arg0: i32) -> (i32, i32) {
    %c0_i32 = arith.constant 0 : i32
    %c0_i32_0 = arith.constant 0 : i32
    %c0_i32_1 = arith.constant 0 : i32
    return %c0_i32, %c0_i32_0 : i32, i32
  }
  func.func @transform_3(%arg0: i32) -> (i32, i32, i32) {
    %c0_i32 = arith.constant 0 : i32
    %c0_i32_0 = arith.constant 0 : i32
    %c0_i32_1 = arith.constant 0 : i32
    return %arg0, %c0_i32, %c0_i32_0 : i32, i32, i32
  }
}

</mosaic_0001>

<bundles_post_ra>
// kernel: reverse.1
= control target key start
LH: loop header
LB: loop body
LE: loop exit
PB: predicated region body
PF: predicated region fallthrough
CT: control target
= control target key end

     0   :  { %v2_v0 = vlaneseq  ;;  %s318_s0 = inlined_call_operand.vmem [shape: f32[2,256], index: 0, kind: input, shape index: {}]   ;;  %s319_s1 = inlined_call_operand.vmem [shape: f32[2,256], index: 1, kind: output, shape index: {}]  }
   0x2   :  { %v3_v1 = vsub.s32 127, %v2_v0 }
   0x4   :  { %4 = vset.pattern.permute.xlu0 %v3_v1 }
   0x5   :  { %s278_s6 = smov 0   ;;  %s280_s7 = smov 0  }
   0x6   :  { %s282_s8 = smov 0  }
   0x7 LB: > { %s208_s9 = sadd.s32 4294967295, %s266_s8   ;;  %s19_s10 = sadd.s32 1, %s262_s7  ;;  %s266_s8 = sphi %s282_s8, %s10_s8   ;;  %s262_s7 = sphi %s280_s7, %s321_s7   ;;  %s258_s6 = sphi %s278_s6, %s320_s6  }
   0x8   : > { %p20_p0 = scmp.ge.s32.totalorder %s19_s10, 2  ;;  %p210_p1 = scmp.ge.s32.totalorder %s266_s8, 2 }
   0x9   : > { %s38_s11 = sand.u32 (!%p210_p1), 1, %s266_s8   ;;  %s41_s12 = ssub.s32 (!%p210_p1), 1, %s262_s7 }
   0xa   : > { %s323_s10 = smov (%p20_p0, %s19_s10), 0  ;;  %36 = sbr.rel (%p210_p1) target bundleno = 17 (0x11), region = 16 }
   0xb   : > { %s211_s13 = sshll.u32 (!%p210_p1), %s38_s11, 1  ;;  %s212_s14 = sshll.u32 (!%p210_p1), %s41_s12, 1 }
   0xc   : > { %s45_s17 = scalar_lea.vmem (!%p210_p1), %s318_s0, %s212_s14  ;;  %s40_s18 = scalar_lea.vmem (!%p210_p1), [#allocation1], %s211_s13 }
   0xf   : > { %v62_v2 = vld [vmem:[%s45_s17] sm:$0x3] }
  0x10   : > { %63 = vst [vmem:[%s40_s18] sm:$0x3] %v62_v2 }
  0x11 PF: > { %p213_p2 = scmp.ge.s32.totalorder %s266_s8, 1  ;;  %p80_p3 = scmp.lt.s32.totalorder %s266_s8, 3 }
  0x13   : > { %p81_p4 = pnand %p213_p2, %p80_p3 }
  0x14   : > { %s91_s19 = sand.u32 (!%p81_p4), 1, %s208_s9   ;;  %s217_s23 = sshll.u32 (!%p81_p4), %s258_s6, 1 }
  0x15   : > { %84 = sbr.rel (%p81_p4) target bundleno = 176 (0xb0), region = 50  ;;  %s214_s20 = sshll.u32 (!%p81_p4), %s91_s19, 1 }
  0x16   : > { %s93_s21 = scalar_lea.vmem (!%p81_p4), [#allocation1], %s214_s20  ;;  %s97_s22 = scalar_lea.vmem (!%p81_p4), [#allocation3], %s214_s20 }
  0x17   : > { %s123_s26 = scalar_lea.vmem (!%p81_p4), %s319_s1, %s217_s23 }
  0x1a   : > { %v101_v3 = vld [vmem:[%s93_s21] sm:$0x3] }
  0x1b   : > { %102 = vst [vmem:[#allocation0] sm:$0x3] %v101_v3 }
  0x22   : > { %v104_v4 = vld [vmem:[#allocation0] sm:$0xff] }
  0x23   : > { %105 = vperm.xlu0 %4, %v104_v4  }
  0x9e   : > { %v106_v5 = vpop.permute.xlu0 %105 }
  0x9f   : > { %107 = vst [vmem:[#allocation2] sm:$0xff] %v106_v5 }
  0xa6   : > { %v112_v6 = vld [vmem:[#allocation2] sm:$0x3] }
  0xa7   : > { %115 = vst [vmem:[%s97_s22] sm:$0x3] %v112_v6 }
  0xae   : > { %v140_v7 = vld [vmem:[%s97_s22] sm:$0x3] }
  0xaf   : > { %141 = vst [vmem:[%s123_s26] sm:$0x3] %v140_v7 }
  0xb0 PF: > { %s10_s8 = sadd.s32 1, %s266_s8   ;;  %s320_s6 = smov %s262_s7 }
  0xb1   : > { %p7_p5 = scmp.ge.s32.totalorder %s10_s8, 4   ;;  %s321_s7 = smov %s323_s10 }
  0xb3   :  { %9 = sbr.rel (!%p7_p5) target bundleno = 7 (0x7), region = 110 }

// kernel: dsp_front_end.1
= control target key start
LH: loop header
LB: loop body
LE: loop exit
PB: predicated region body
PF: predicated region fallthrough
CT: control target
= control target key end

     0   :  { %8 = vsyncpa [#allocation4], 0  ;;  %s1204_s0 = inlined_call_operand.vmem [shape: f32[2,1,2000], index: 0, kind: input, shape index: {}]   ;;  %s1205_s1 = inlined_call_operand.hbm [shape: f32[400,256], index: 1, kind: input, shape index: {}]   ;;  %s1206_s2 = inlined_call_operand.hbm [shape: f32[400,256], index: 2, kind: input, shape index: {}]   ;;  %s1207_s3 = inlined_call_operand.vmem [shape: f32[2,11,256], index: 3, kind: output, shape index: {}]  }
   0x1   :  { %9 = vsyncpa [#allocation6], 0  ;;  %s1060_s12 = smov 0  }
   0x2 LB: > { %s1066_s13 = sadd.s32 4294967295, %s1031_s12   ;;  %p914_p0 = scmp.ge.s32.totalorder %s1031_s12, 1  ;;  %s1031_s12 = sphi %s1060_s12, %s15_s12  }
   0x3   : > { %p114_p1 = scmp.lt.s32.totalorder %s1031_s12, 3  ;;  %s1033_s14 = smov [#allocation3]  }
   0x4   : > { %s126_s15 = sshll.u32 %s1033_s14, 4  ;;  %p946_p3 = scmp.eq.s32.totalorder %s1066_s13, 0  ;;  %s127_s15 = int_to_ptr.vmem [resolvable:$true] %s126_s15 }
   0x5   : > { %p1070_p2 = pnand %p914_p0, %p114_p1  ;;  %s1034_s17 = smov [#allocation5]  }
   0x6   : > { %s139_s18 = sshll.u32 %s1034_s17, 4  ;;  %s976_s20 = scalar_lea.vmem %s127_s15, 12800  ;;  %s140_s18 = int_to_ptr.vmem [resolvable:$true] %s139_s18 }
   0x7   : > { %p939_p4 = pneg %p1070_p2  ;;  %p977_p7 = scmp.ne.s32.totalorder %s127_s15, %s976_s20 }
   0x8   : > { %p984_p10 = scmp.lt.s32.totalorder %s127_s15, %s127_s15  ;;  %p985_p11 = scmp.lt.s32.totalorder %s976_s20, %s976_s20 }
   0x9   : > { %p1079_p5 = pnand %p946_p3, %p939_p4 }
   0xa   : > { %p986_p12 = por %p985_p11, %p984_p10 }
   0xb   : > { %p967_p6 = pneg %p1079_p5 }
   0xd   : > { %p979_p8 = pnand %p977_p7, %p967_p6 }
   0xf   : > { %p980_p9 = pneg %p979_p8 }
  0x11   : > { %p987_p13 = pnand %p986_p12, %p980_p9 }
  0x13   : > { %990 = shalt.err (!%p987_p13)
}
  0x14   : > { %s1035_s21 = smov 256   ;;  %s1036_s22 = smov 16  }
  0x15   : > { %942 = dma.hbm_to_vmem [thread:$0]  (!%p1079_p5), %s1205_s1, 12800, %s127_s15, [#allocation4], %s1035_s21, %s1035_s21, %s1036_s22  }
  0x16   : > { %s1002_s25 = scalar_lea.vmem %s140_s18, 12800  ;;  %p1010_p7 = scmp.lt.s32.totalorder %s140_s18, %s140_s18 }
  0x17   : > { %p1003_p0 = scmp.ne.s32.totalorder %s140_s18, %s1002_s25  ;;  %p1011_p8 = scmp.lt.s32.totalorder %s1002_s25, %s1002_s25 }
  0x19   : > { %p1005_p1 = pnand %p1003_p0, %p967_p6  ;;  %p1012_p10 = por %p1011_p8, %p1010_p7 }
  0x1b   : > { %p1006_p4 = pneg %p1005_p1 }
  0x1d   : > { %p1013_p9 = pnand %p1012_p10, %p1006_p4 }
  0x1f   : > { %1016 = shalt.err (!%p1013_p9)
}
  0x20   : > { %945 = dma.hbm_to_vmem [thread:$0]  (!%p1079_p5), %s1206_s2, 12800, %s140_s18, [#allocation6], %s1035_s21, %s1035_s21, %s1036_s22  }
  0x21   : > { %162 = sbr.rel (%p1070_p2) target bundleno = 456 (0x1c8), region = 32 }
  0x26   : > { %1022 = dma.done.wait (%p946_p3), [#allocation4], 12800  }
  0x27   : > { %1024 = vsyncadd (%p946_p3), [#allocation4], 4294954496 }
  0x28   : > { %1026 = dma.done.wait (%p946_p3), [#allocation6], 12800  }
  0x29   : > { %1028 = vsyncadd (%p946_p3), [#allocation6], 4294954496  ;;  %p189_p6 = scmp.lt.s32.totalorder %s1066_s13, 1  ;;  %s1037_s5 = smov 32   ;;  %v335_v2 = vld [vmem:[#allocation3 + $0xf8] sm:$0xff]  ;;  %v334_v5 = vld [vmem:[#allocation3 + $0xf0] sm:$0xff]  ;;  %v199_v59 = vlaneseq }
  0x2a   : > { %s1038_s6 = smov 96   ;;  %411 = vmatprep.subr.mxu0 %v335_v2  ;;  %v333_v6 = vld [vmem:[#allocation3 + $0xe8] sm:$0xff]  ;;  %v332_v7 = vld [vmem:[#allocation3 + $0xe0] sm:$0xff]  ;;  %s1039_s7 = smov 64   ;;  %v331_v8 = vld [vmem:[#allocation3 + $0xd8] sm:$0xff]  ;;  %vm232_vm1 = vcmask 261120  }
  0x2b   : > { %s1213_s13 = smov (!%p189_p6, %s1066_s13), 1  ;;  %412 = vmatpush1.msra.mxu0 %v334_v5  ;;  %v330_v11 = vld [vmem:[#allocation3 + $0xd0] sm:$0xff]  ;;  %v329_v12 = vld [vmem:[#allocation3 + $0xc8] sm:$0xff]  ;;  %v328_v13 = vld [vmem:[#allocation3 + $0xc0] sm:$0xff]  ;;  %vm1132_vm0 = vcmp.lt.s32.totalorder %v199_v59, 400  ;;  %vm210_vm2 = vcmask 785408  }
  0x2c   : > { %s921_s28 = sshll.u32 %s1213_s13, 4  ;;  %413 = vmatprep.subr.mxu0 %v333_v6  ;;  %v327_v16 = vld [vmem:[#allocation3 + $0xb8] sm:$0xff]  ;;  %v326_v17 = vld [vmem:[#allocation3 + $0xb0] sm:$0xff]  ;;  %v325_v19 = vld [vmem:[#allocation3 + $0xa8] sm:$0xff]  ;;  %vm221_vm3 = vcmask 523264   ;;  %vm404_vm4 = vcmask 130048  }
  0x2d   : > { %s1119_s4 = scalar_lea.vmem %s1204_s0, %s921_s28  ;;  %414 = vmatpush1.msra.mxu0 %v332_v7  ;;  %v399_v18 = vld [vmem:[#allocation3 + $0x2f8] sm:$0xff]  ;;  %v398_v20 = vld [vmem:[#allocation3 + $0x2f0] sm:$0xff]  ;;  %v397_v21 = vld [vmem:[#allocation3 + $0x2e8] sm:$0xff]  ;;  %s930_s8 = sshll.u32 %s1213_s13, 5 }
  0x2e   : > { %v227_v0 = vld [vmem:[%s1119_s4 + $0x3] sm:$0xf]  ;;  %v262_v9 = vld [vmem:[%s1119_s4 + $0x8] sm:$0xf]  ;;  %415 = vmatprep.subr.mxu0 %v331_v8  ;;  %v286_v14 = vld [vmem:[%s1119_s4 + $0xc] sm:$0xf]  ;;  %488 = vmatprep.subr.mxu1 %v399_v18  ;;  %s197_s11 = scalar_lea.vmem %s1207_s3, %s930_s8 }
  0x2f   : > { %v205_v1 = vld [vmem:[%s1119_s4 + $0x1] sm:$0xf]  ;;  %229 = vrot.lane.b32.xlu1 %v227_v0, %s1037_s5  ;;  %v242_v3 = vld [vmem:[%s1119_s4 + $0x6] sm:$0xf]  ;;  %v276_v15 = vld [vmem:[%s1119_s4 + $0xb] sm:$0xf]  ;;  %416 = vmatpush1.msra.mxu0 %v330_v11 }
  0x30   : > { %207 = vrot.lane.b32.xlu0 %v205_v1, %s1038_s6  ;;  %v216_v4 = vld [vmem:[%s1119_s4 + $0x2] sm:$0xf]  ;;  %v252_v10 = vld [vmem:[%s1119_s4 + $0x7] sm:$0xf]  ;;  %417 = vmatprep.subr.mxu0 %v329_v12  ;;  %v323_v24 = vld [vmem:[#allocation3 + $0x98] sm:$0xff] }
  0x31   : > { %418 = vmatpush1.msra.mxu0 %v328_v13  ;;  %v324_v22 = vld [vmem:[#allocation3 + $0xa0] sm:$0xff]  ;;  %489 = vmatpush1.msra.mxu1 %v398_v20  ;;  %v395_v25 = vld [vmem:[#allocation3 + $0x2d8] sm:$0xff]  ;;  %v322_v26 = vld [vmem:[#allocation3 + $0x90] sm:$0xff] }
  0x32   : > { %419 = vmatprep.subr.mxu0 %v327_v16  ;;  %v396_v23 = vld [vmem:[#allocation3 + $0x2e0] sm:$0xff]  ;;  %490 = vmatprep.subr.mxu1 %v397_v21  ;;  %v394_v27 = vld [vmem:[#allocation3 + $0x2d0] sm:$0xff]  ;;  %v321_v28 = vld [vmem:[#allocation3 + $0x88] sm:$0xff] }
  0x33   : > { %244 = vrot.lane.b32.xlu1 %v242_v3, %s1038_s6  ;;  %420 = vmatpush1.msra.mxu0 %v326_v17  ;;  %v393_v29 = vld [vmem:[#allocation3 + $0x2c8] sm:$0xff]  ;;  %v320_v30 = vld [vmem:[#allocation3 + $0x80] sm:$0xff]  ;;  %v319_v32 = vld [vmem:[#allocation3 + $0x78] sm:$0xff] }
  0x34   : > { %218 = vrot.lane.b32.xlu0 %v216_v4, %s1039_s7  ;;  %421 = vmatprep.subr.mxu0 %v325_v19  ;;  %v392_v31 = vld [vmem:[#allocation3 + $0x2c0] sm:$0xff]  ;;  %v391_v33 = vld [vmem:[#allocation3 + $0x2b8] sm:$0xff]  ;;  %v318_v34 = vld [vmem:[#allocation3 + $0x70] sm:$0xff] }
  0x35   : > { %422 = vmatpush1.msra.mxu0 %v324_v22  ;;  %491 = vmatpush1.msra.mxu1 %v396_v23  ;;  %v390_v35 = vld [vmem:[#allocation3 + $0x2b0] sm:$0xff]  ;;  %v317_v36 = vld [vmem:[#allocation3 + $0x68] sm:$0xff]  ;;  %v316_v38 = vld [vmem:[#allocation3 + $0x60] sm:$0xff] }
  0x36   : > { %423 = vmatprep.subr.mxu0 %v323_v24  ;;  %492 = vmatprep.subr.mxu1 %v395_v25  ;;  %v389_v37 = vld [vmem:[#allocation3 + $0x2a8] sm:$0xff]  ;;  %v388_v39 = vld [vmem:[#allocation3 + $0x2a0] sm:$0xff]  ;;  %v315_v40 = vld [vmem:[#allocation3 + $0x58] sm:$0xff] }
  0x37   : > { %264 = vrot.lane.b32.xlu1 %v262_v9, %s1037_s5  ;;  %424 = vmatpush1.msra.mxu0 %v322_v26  ;;  %v387_v41 = vld [vmem:[#allocation3 + $0x298] sm:$0xff]  ;;  %v314_v42 = vld [vmem:[#allocation3 + $0x50] sm:$0xff]  ;;  %v313_v44 = vld [vmem:[#allocation3 + $0x48] sm:$0xff] }
  0x38   : > { %254 = vrot.lane.b32.xlu0 %v252_v10, %s1039_s7  ;;  %493 = vmatpush1.msra.mxu1 %v394_v27  ;;  %v386_v43 = vld [vmem:[#allocation3 + $0x290] sm:$0xff]  ;;  %v385_v45 = vld [vmem:[#allocation3 + $0x288] sm:$0xff]  ;;  %v312_v46 = vld [vmem:[#allocation3 + $0x40] sm:$0xff] }
  0x39   : > { %425 = vmatprep.subr.mxu0 %v321_v28  ;;  %494 = vmatprep.subr.mxu1 %v393_v29  ;;  %v384_v47 = vld [vmem:[#allocation3 + $0x280] sm:$0xff]  ;;  %v311_v48 = vld [vmem:[#allocation3 + $0x38] sm:$0xff]  ;;  %v310_v50 = vld [vmem:[#allocation3 + $0x30] sm:$0xff] }
  0x3a   : > { %426 = vmatpush1.msra.mxu0 %v320_v30  ;;  %495 = vmatpush1.msra.mxu1 %v392_v31  ;;  %v383_v49 = vld [vmem:[#allocation3 + $0x278] sm:$0xff]  ;;  %v382_v51 = vld [vmem:[#allocation3 + $0x270] sm:$0xff]  ;;  %v309_v52 = vld [vmem:[#allocation3 + $0x28] sm:$0xff] }
  0x3b   : > { %288 = vrot.lane.b32.xlu1 %v286_v14, %s1039_s7  ;;  %427 = vmatprep.subr.mxu0 %v319_v32  ;;  %v381_v53 = vld [vmem:[#allocation3 + $0x268] sm:$0xff]  ;;  %v308_v54 = vld [vmem:[#allocation3 + $0x20] sm:$0xff]  ;;  %v307_v56 = vld [vmem:[#allocation3 + $0x18] sm:$0xff] }
  0x3c   : > { %278 = vrot.lane.b32.xlu0 %v276_v15, %s1038_s6  ;;  %496 = vmatprep.subr.mxu1 %v391_v33  ;;  %v380_v55 = vld [vmem:[#allocation3 + $0x260] sm:$0xff]  ;;  %v379_v57 = vld [vmem:[#allocation3 + $0x258] sm:$0xff]  ;;  %v306_v58 = vld [vmem:[#allocation3 + $0x10] sm:$0xff] }
  0x3d   : > { %428 = vmatpush1.msra.mxu0 %v318_v34  ;;  %497 = vmatpush1.msra.mxu1 %v390_v35  ;;  %v378_v60 = vld [vmem:[#allocation3 + $0x250] sm:$0xff]  ;;  %v305_v61 = vld [vmem:[#allocation3 + $0x8] sm:$0xff]  ;;  %v304_v63 = vld [vmem:[#allocation3] sm:$0xff] }
  0x3e   : > { %429 = vmatprep.subr.mxu0 %v317_v36  ;;  %498 = vmatprep.subr.mxu1 %v389_v37  ;;  %v377_v62 = vld [vmem:[#allocation3 + $0x248] sm:$0xff]  ;;  %v376_v0 = vld [vmem:[#allocation3 + $0x240] sm:$0xff]  ;;  %v367_v1 = vld [vmem:[#allocation3 + $0x1f8] sm:$0xff] }
  0x3f   : > { %430 = vmatpush1.msra.mxu0 %v316_v38  ;;  %499 = vmatpush1.msra.mxu1 %v388_v39  ;;  %v366_v2 = vld [vmem:[#allocation3 + $0x1f0] sm:$0xff]  ;;  %v375_v3 = vld [vmem:[#allocation3 + $0x238] sm:$0xff]  ;;  %v198_v6 = vld [vmem:[%s1119_s4] sm:$0xf] }
  0x40   : > { %431 = vmatprep.subr.mxu0 %v315_v40  ;;  %500 = vmatprep.subr.mxu1 %v387_v41  ;;  %v374_v5 = vld [vmem:[#allocation3 + $0x230] sm:$0xff]  ;;  %v238_v7 = vld [vmem:[%s1119_s4 + $0x5] sm:$0xf]  ;;  %203 = vst.msk [vmem:[#allocation2] ss:$8 sm:$0xf] %vm1132_vm0, %v198_v6 }
  0x41   : > { %432 = vmatpush1.msra.mxu0 %v314_v42  ;;  %501 = vmatpush1.msra.mxu1 %v386_v43  ;;  %v365_v8 = vld [vmem:[#allocation3 + $0x1e8] sm:$0xff]  ;;  %240 = vst.msk [vmem:[#allocation2 + $0x4] ss:$8 sm:$0xf] %vm1132_vm0, %v238_v7  ;;  %v364_v10 = vld [vmem:[#allocation3 + $0x1e0] sm:$0xff]  ;;  %v363_v12 = vld [vmem:[#allocation3 + $0x1d8] sm:$0xff] }
  0x42   : > { %433 = vmatprep.subr.mxu0 %v313_v44  ;;  %502 = vmatprep.subr.mxu1 %v385_v45  ;;  %v373_v9 = vld [vmem:[#allocation3 + $0x228] sm:$0xff]  ;;  %v372_v11 = vld [vmem:[#allocation3 + $0x220] sm:$0xff]  ;;  %v371_v13 = vld [vmem:[#allocation3 + $0x218] sm:$0xff] }
  0x43   : > { %434 = vmatpush1.msra.mxu0 %v312_v46  ;;  %503 = vmatpush1.msra.mxu1 %v384_v47  ;;  %v272_v14 = vld [vmem:[%s1119_s4 + $0xa] sm:$0xf]  ;;  %v362_v15 = vld [vmem:[#allocation3 + $0x1d0] sm:$0xff]  ;;  %v360_v19 = vld [vmem:[#allocation3 + $0x1c0] sm:$0xff] }
  0x44   : > { %435 = vmatprep.subr.mxu0 %v311_v48  ;;  %504 = vmatprep.subr.mxu1 %v383_v49  ;;  %v370_v16 = vld [vmem:[#allocation3 + $0x210] sm:$0xff]  ;;  %274 = vst.msk [vmem:[#allocation2 + $0x20] ss:$8 sm:$0xf] %vm1132_vm0, %v272_v14  ;;  %v361_v17 = vld [vmem:[#allocation3 + $0x1c8] sm:$0xff]  ;;  %v368_v20 = vld [vmem:[#allocation3 + $0x200] sm:$0xff] }
  0x45   : > { %436 = vmatpush1.msra.mxu0 %v310_v50  ;;  %505 = vmatpush1.msra.mxu1 %v382_v51  ;;  %v369_v18 = vld [vmem:[#allocation3 + $0x208] sm:$0xff]  ;;  %v359_v21 = vld [vmem:[#allocation3 + $0x1b8] sm:$0xff]  ;;  %v358_v23 = vld [vmem:[#allocation3 + $0x1b0] sm:$0xff] }
  0x46   : > { %437 = vmatprep.subr.mxu0 %v309_v52  ;;  %506 = vmatprep.subr.mxu1 %v381_v53  ;;  %v403_v22 = vld [vmem:[#allocation3 + $0x318] sm:$0xff]  ;;  %v402_v24 = vld [vmem:[#allocation3 + $0x310] sm:$0xff]  ;;  %v357_v25 = vld [vmem:[#allocation3 + $0x1a8] sm:$0xff] }
  0x47   : > { %438 = vmatpush1.msra.mxu0 %v308_v54  ;;  %507 = vmatpush1.msra.mxu1 %v380_v55  ;;  %v401_v26 = vld [vmem:[#allocation3 + $0x308] sm:$0xff]  ;;  %v356_v27 = vld [vmem:[#allocation3 + $0x1a0] sm:$0xff]  ;;  %v355_v29 = vld [vmem:[#allocation3 + $0x198] sm:$0xff] }
  0x48   : > { %439 = vmatprep.subr.mxu0 %v307_v56  ;;  %508 = vmatprep.subr.mxu1 %v379_v57  ;;  %v400_v28 = vld [vmem:[#allocation3 + $0x300] sm:$0xff]  ;;  %v596_v30 = vld [vmem:[#allocation5 + $0xf8] sm:$0xff]  ;;  %v354_v31 = vld [vmem:[#allocation3 + $0x190] sm:$0xff] }
  0x49   : > { %440 = vmatpush1.msra.mxu0 %v306_v58  ;;  %509 = vmatpush1.msra.mxu1 %v378_v60  ;;  %v353_v32 = vld [vmem:[#allocation3 + $0x188] sm:$0xff]  ;;  %v352_v33 = vld [vmem:[#allocation3 + $0x180] sm:$0xff]  ;;  %v351_v34 = vld [vmem:[#allocation3 + $0x178] sm:$0xff] }
  0x4a   : > { %441 = vmatprep.subr.mxu0 %v305_v61  ;;  %510 = vmatprep.subr.mxu1 %v377_v62  ;;  %v350_v35 = vld [vmem:[#allocation3 + $0x170] sm:$0xff]  ;;  %v349_v36 = vld [vmem:[#allocation3 + $0x168] sm:$0xff]  ;;  %v348_v37 = vld [vmem:[#allocation3 + $0x160] sm:$0xff] }
  0x4b   : > { %442 = vmatpush1.msra.mxu0 %v304_v63  ;;  %511 = vmatpush1.msra.mxu1 %v376_v0  ;;  %v347_v38 = vld [vmem:[#allocation3 + $0x158] sm:$0xff]  ;;  %v346_v39 = vld [vmem:[#allocation3 + $0x150] sm:$0xff]  ;;  %v345_v40 = vld [vmem:[#allocation3 + $0x148] sm:$0xff] }
  0x4c   : > { %443 = vmatprep.subr.mxu0 %v367_v1  ;;  %512 = vmatprep.subr.mxu1 %v375_v3  ;;  %v344_v41 = vld [vmem:[#allocation3 + $0x140] sm:$0xff]  ;;  %v343_v42 = vld [vmem:[#allocation3 + $0x138] sm:$0xff]  ;;  %v342_v43 = vld [vmem:[#allocation3 + $0x130] sm:$0xff] }
  0x4d   : > { %444 = vmatpush2.msra.mxu0 %v366_v2  ;;  %513 = vmatpush1.msra.mxu1 %v374_v5  ;;  %v341_v44 = vld [vmem:[#allocation3 + $0x128] sm:$0xff]  ;;  %v340_v45 = vld [vmem:[#allocation3 + $0x120] sm:$0xff]  ;;  %v339_v46 = vld [vmem:[#allocation3 + $0x118] sm:$0xff] }
  0x4e   : > { %445 = vmatprep.subr.mxu0 %v365_v8  ;;  %514 = vmatprep.subr.mxu1 %v373_v9  ;;  %v338_v47 = vld [vmem:[#allocation3 + $0x110] sm:$0xff]  ;;  %v337_v48 = vld [vmem:[#allocation3 + $0x108] sm:$0xff]  ;;  %v336_v49 = vld [vmem:[#allocation3 + $0x100] sm:$0xff] }
  0x4f   : > { %446 = vmatpush2.msra.mxu0 %v364_v10  ;;  %515 = vmatpush1.msra.mxu1 %v372_v11  ;;  %v660_v50 = vld [vmem:[#allocation5 + $0x2f8] sm:$0xff]  ;;  %v593_v4 = vld [vmem:[#allocation5 + $0xe0] sm:$0xff] }
  0x50   : > { %447 = vmatprep.subr.mxu0 %v363_v12  ;;  %516 = vmatprep.subr.mxu1 %v371_v13  ;;  %v595_v12 = vld [vmem:[#allocation5 + $0xf0] sm:$0xff] }
  0x51   : > { %448 = vmatpush2.msra.mxu0 %v362_v15  ;;  %517 = vmatpush1.msra.mxu1 %v370_v16  ;;  %v659_v13 = vld [vmem:[#allocation5 + $0x2f0] sm:$0xff] }
  0x52   : > { %449 = vmatprep.subr.mxu0 %v361_v17  ;;  %518 = vmatprep.subr.mxu1 %v369_v18  ;;  %v594_v18 = vld [vmem:[#allocation5 + $0xe8] sm:$0xff] }
  0x53   : > { %450 = vmatpush2.msra.mxu0 %v360_v19  ;;  %519 = vmatpush1.msra.mxu1 %v368_v20  ;;  %v658_v19 = vld [vmem:[#allocation5 + $0x2e8] sm:$0xff]  ;;  %v657_v20 = vld [vmem:[#allocation5 + $0x2e0] sm:$0xff] }
  0x54   : > { %451 = vmatprep.subr.mxu0 %v359_v21  ;;  %548 = vmatprep.subr.mxu1 %v403_v22  ;;  %v592_v21 = vld [vmem:[#allocation5 + $0xd8] sm:$0xff] }
  0x55   : > { %452 = vmatpush2.msra.mxu0 %v358_v23  ;;  %549 = vmatpush2.msra.mxu1 %v402_v24  ;;  %v656_v24 = vld [vmem:[#allocation5 + $0x2d8] sm:$0xff] }
  0x56   : > { %453 = vmatprep.subr.mxu0 %v357_v25  ;;  %550 = vmatprep.subr.mxu1 %v401_v26 }
  0x57   : > { %454 = vmatpush2.msra.mxu0 %v356_v27  ;;  %551 = vmatpush2.msra.mxu1 %v400_v28  ;;  %v591_v27 = vld [vmem:[#allocation5 + $0xd0] sm:$0xff] }
  0x58   : > { %455 = vmatprep.subr.mxu0 %v355_v29  ;;  %665 = vmatprep.subr.mxu1 %v596_v30  ;;  %v655_v28 = vld [vmem:[#allocation5 + $0x2d0] sm:$0xff]  ;;  %v590_v29 = vld [vmem:[#allocation5 + $0xc8] sm:$0xff] }
  0x59   : > { %456 = vmatpush2.msra.mxu0 %v354_v31  ;;  %v654_v30 = vld [vmem:[#allocation5 + $0x2c8] sm:$0xff]  ;;  %v589_v31 = vld [vmem:[#allocation5 + $0xc0] sm:$0xff] }
  0x5a   : > { %457 = vmatprep.subr.mxu0 %v353_v32  ;;  %v653_v32 = vld [vmem:[#allocation5 + $0x2c0] sm:$0xff] }
  0x5b   : > { %458 = vmatpush2.msra.mxu0 %v352_v33  ;;  %v588_v33 = vld [vmem:[#allocation5 + $0xb8] sm:$0xff] }
  0x5c   : > { %459 = vmatprep.subr.mxu0 %v351_v34  ;;  %v652_v34 = vld [vmem:[#allocation5 + $0x2b8] sm:$0xff] }
  0x5d   : > { %460 = vmatpush2.msra.mxu0 %v350_v35  ;;  %v587_v35 = vld [vmem:[#allocation5 + $0xb0] sm:$0xff] }
  0x5e   : > { %461 = vmatprep.subr.mxu0 %v349_v36  ;;  %v651_v36 = vld [vmem:[#allocation5 + $0x2b0] sm:$0xff] }
  0x5f   : > { %462 = vmatpush2.msra.mxu0 %v348_v37  ;;  %v586_v37 = vld [vmem:[#allocation5 + $0xa8] sm:$0xff] }
  0x60   : > { %463 = vmatprep.subr.mxu0 %v347_v38  ;;  %v650_v38 = vld [vmem:[#allocation5 + $0x2a8] sm:$0xff] }
  0x61   : > { %464 = vmatpush2.msra.mxu0 %v346_v39  ;;  %v585_v39 = vld [vmem:[#allocation5 + $0xa0] sm:$0xff] }
  0x62   : > { %465 = vmatprep.subr.mxu0 %v345_v40  ;;  %v649_v40 = vld [vmem:[#allocation5 + $0x2a0] sm:$0xff] }
  0x63   : > { %466 = vmatpush2.msra.mxu0 %v344_v41  ;;  %v584_v41 = vld [vmem:[#allocation5 + $0x98] sm:$0xff] }
  0x64   : > { %467 = vmatprep.subr.mxu0 %v343_v42  ;;  %v648_v42 = vld [vmem:[#allocation5 + $0x298] sm:$0xff] }
  0x65   : > { %468 = vmatpush2.msra.mxu0 %v342_v43  ;;  %v583_v43 = vld [vmem:[#allocation5 + $0x90] sm:$0xff] }
  0x66   : > { %469 = vmatprep.subr.mxu0 %v341_v44  ;;  %v647_v44 = vld [vmem:[#allocation5 + $0x290] sm:$0xff] }
  0x67   : > { %470 = vmatpush2.msra.mxu0 %v340_v45  ;;  %v582_v45 = vld [vmem:[#allocation5 + $0x88] sm:$0xff] }
  0x68   : > { %471 = vmatprep.subr.mxu0 %v339_v46  ;;  %v646_v46 = vld [vmem:[#allocation5 + $0x288] sm:$0xff] }
  0x69   : > { %472 = vmatpush2.msra.mxu0 %v338_v47  ;;  %v581_v47 = vld [vmem:[#allocation5 + $0x80] sm:$0xff] }
  0x6a   : > { %473 = vmatprep.subr.mxu0 %v337_v48  ;;  %v645_v48 = vld [vmem:[#allocation5 + $0x280] sm:$0xff] }
  0x6b   : > { %474 = vmatpush2.msra.mxu0 %v336_v49  ;;  %v580_v49 = vld [vmem:[#allocation5 + $0x78] sm:$0xff] }
  0x6c   : > { %742 = vmatprep.subr.mxu0 %v660_v50  ;;  %v644_v50 = vld [vmem:[#allocation5 + $0x278] sm:$0xff] }
  0xa1   : > { %v230_v51 = vpop.permute.xlu1 %229 }
  0xa2   : > { %v208_v52 = vpop.permute.xlu0 %207  ;;  %v231_v53 = vrot.slane %v230_v51, 1 }
  0xa3   : > { %v209_v54 = vrot.slane %v208_v52, 1 }
  0xa4   : > { %v233_v55 = vsel %vm232_vm1, %v230_v51, %v231_v53  ;;  %v579_v51 = vld [vmem:[#allocation5 + $0x70] sm:$0xff]  ;;  %v578_v53 = vld [vmem:[#allocation5 + $0x68] sm:$0xff] }
  0xa5   : > { %v211_v56 = vsel %vm210_vm2, %v208_v52, %v209_v54  ;;  %236 = vst.msk [vmem:[#allocation2 + $0x3] ss:$8 sm:$0xf] %vm1132_vm0, %v233_v55  ;;  %v245_v57 = vpop.permute.xlu1 %244  ;;  %v643_v52 = vld [vmem:[#allocation5 + $0x270] sm:$0xff]  ;;  %v642_v54 = vld [vmem:[#allocation5 + $0x268] sm:$0xff]  ;;  %v577_v55 = vld [vmem:[#allocation5 + $0x60] sm:$0xff] }
  0xa6   : > { %214 = vst.msk [vmem:[#allocation2 + $0x1] ss:$8 sm:$0xf] %vm1132_vm0, %v211_v56  ;;  %v219_v58 = vpop.permute.xlu0 %218  ;;  %v246_v59 = vrot.slane %v245_v57, 1  ;;  %v641_v56 = vld [vmem:[#allocation5 + $0x260] sm:$0xff] }
  0xa7   : > { %v220_v60 = vrot.slane %v219_v58, 1 }
  0xa8   : > { %v247_v61 = vsel %vm210_vm2, %v245_v57, %v246_v59  ;;  %v576_v57 = vld [vmem:[#allocation5 + $0x58] sm:$0xff]  ;;  %v575_v59 = vld [vmem:[#allocation5 + $0x50] sm:$0xff] }
  0xa9   : > { %v222_v62 = vsel %vm221_vm3, %v219_v58, %v220_v60  ;;  %250 = vst.msk [vmem:[#allocation2 + $0x5] ss:$8 sm:$0xf] %vm1132_vm0, %v247_v61  ;;  %v265_v63 = vpop.permute.xlu1 %264  ;;  %v640_v58 = vld [vmem:[#allocation5 + $0x258] sm:$0xff]  ;;  %v639_v60 = vld [vmem:[#allocation5 + $0x250] sm:$0xff]  ;;  %v574_v61 = vld [vmem:[#allocation5 + $0x48] sm:$0xff] }
  0xaa   : > { %225 = vst.msk [vmem:[#allocation2 + $0x2] ss:$8 sm:$0xf] %vm1132_vm0, %v222_v62  ;;  %v255_v0 = vpop.permute.xlu0 %254  ;;  %v266_v1 = vrot.slane %v265_v63, 1  ;;  %v638_v62 = vld [vmem:[#allocation5 + $0x248] sm:$0xff] }
  0xab   : > { %v256_v2 = vrot.slane %v255_v0, 1 }
  0xac   : > { %v267_v3 = vsel %vm232_vm1, %v265_v63, %v266_v1  ;;  %v573_v63 = vld [vmem:[#allocation5 + $0x40] sm:$0xff]  ;;  %v572_v1 = vld [vmem:[#allocation5 + $0x38] sm:$0xff] }
  0xad   : > { %v257_v5 = vsel %vm221_vm3, %v255_v0, %v256_v2  ;;  %270 = vst.msk [vmem:[#allocation2 + $0x7] ss:$8 sm:$0xf] %vm1132_vm0, %v267_v3  ;;  %v289_v6 = vpop.permute.xlu1 %288  ;;  %v637_v0 = vld [vmem:[#allocation5 + $0x240] sm:$0xff]  ;;  %v636_v2 = vld [vmem:[#allocation5 + $0x238] sm:$0xff]  ;;  %v571_v3 = vld [vmem:[#allocation5 + $0x30] sm:$0xff] }
  0xae   : > { %260 = vst.msk [vmem:[#allocation2 + $0x6] ss:$8 sm:$0xf] %vm1132_vm0, %v257_v5  ;;  %v279_v7 = vpop.permute.xlu0 %278  ;;  %v290_v8 = vrot.slane %v289_v6, 1  ;;  %v635_v5 = vld [vmem:[#allocation5 + $0x230] sm:$0xff] }
  0xaf   : > { %v280_v9 = vrot.slane %v279_v7, 1 }
  0xb0   : > { %v291_v10 = vsel %vm221_vm3, %v289_v6, %v290_v8  ;;  %v570_v6 = vld [vmem:[#allocation5 + $0x28] sm:$0xff]  ;;  %v569_v8 = vld [vmem:[#allocation5 + $0x20] sm:$0xff] }
  0xb1   : > { %v281_v11 = vsel %vm210_vm2, %v279_v7, %v280_v9  ;;  %294 = vst.msk [vmem:[#allocation2 + $0x22] ss:$8 sm:$0xf] %vm1132_vm0, %v291_v10  ;;  %v634_v7 = vld [vmem:[#allocation5 + $0x228] sm:$0xff]  ;;  %v633_v9 = vld [vmem:[#allocation5 + $0x220] sm:$0xff]  ;;  %v568_v10 = vld [vmem:[#allocation5 + $0x18] sm:$0xff] }
  0xb2   : > { %284 = vst.msk [vmem:[#allocation2 + $0x21] ss:$8 sm:$0xf] %vm1132_vm0, %v281_v11  ;;  %v632_v11 = vld [vmem:[#allocation5 + $0x218] sm:$0xff] }
  0xb5   : > { %v297_v14 = vld [vmem:[#allocation2 + $0x8] sm:$0xff]  ;;  %v299_v15 = vld [vmem:[#allocation2 + $0x18] sm:$0xff]  ;;  %v1169_v16 = vld [vmem:[#allocation2] sm:$0xff] }
  0xb6   : > { %475 = vmatprep.mubr.f32.mxu0 %v297_v14  ;;  %924 = vmatprep.mubr.msk.f32.mxu1 %vm404_vm4, %v299_v15  ;;  %v1172_v17 = vld [vmem:[#allocation2 + $0x10] sm:$0xff] }
  0xb7   : > { %476 = vmatmul.mubr.f32.vlgmr.msra.gmra.mxu0 %v1169_v16  ;;  %553 = vmatmul.mubr.f32.vlgmr.msra.gmra.mxu1 %v1172_v17 }
  0xb8   : > { %666 = vmatpush1.msra.mxu1 %v595_v12  ;;  %743 = vmatpush1.msra.mxu0 %v659_v13  ;;  %v567_v12 = vld [vmem:[#allocation5 + $0x10] sm:$0xff] }
  0xb9   : > { %667 = vmatprep.subr.mxu1 %v594_v18  ;;  %744 = vmatprep.subr.mxu0 %v658_v19  ;;  %v1176_v22 = vld [vmem:[#allocation2 + $0x28] sm:$0x7]  ;;  %v1178_v23 = vld [vmem:[#allocation2 + $0x38] sm:$0x7]  ;;  %v1180_v25 = vld [vmem:[#allocation2 + $0x20] sm:$0x7] }
  0xba   : > { %668 = vmatpush1.msra.mxu1 %v593_v4  ;;  %745 = vmatpush1.msra.mxu0 %v657_v20  ;;  %v1182_v26 = vld [vmem:[#allocation2 + $0x30] sm:$0x7]  ;;  %v565_v18 = vld [vmem:[#allocation5] sm:$0xff]  ;;  %v628_v4 = vld [vmem:[#allocation5 + $0x1f8] sm:$0xff] }
  0xbb   : > { %481 = vmatprep.mubr.f32.mxu0 %v1176_v22  ;;  %925 = vmatprep.mubr.msk.f32.mxu1 %vm404_vm4, %v1178_v23  ;;  %v631_v13 = vld [vmem:[#allocation5 + $0x210] sm:$0xff]  ;;  %v629_v19 = vld [vmem:[#allocation5 + $0x200] sm:$0xff]  ;;  %v664_v20 = vld [vmem:[#allocation5 + $0x318] sm:$0xff] }
  0xbc   : > { %669 = vmatprep.subr.mxu1 %v592_v21  ;;  %746 = vmatprep.subr.mxu0 %v656_v24  ;;  %v627_v21 = vld [vmem:[#allocation5 + $0x1f0] sm:$0xff] }
  0xbd   : > { %482 = vmatmul.mubr.f32.gmra.mxu0 %v1180_v25  ;;  %559 = vmatmul.mubr.f32.gmra.mxu1 %v1182_v26  ;;  %v663_v24 = vld [vmem:[#allocation5 + $0x310] sm:$0xff] }
  0xbe   : > { %670 = vmatpush1.msra.mxu1 %v591_v27  ;;  %747 = vmatpush1.msra.mxu0 %v655_v28  ;;  %v626_v27 = vld [vmem:[#allocation5 + $0x1e8] sm:$0xff] }
  0xbf   : > { %671 = vmatprep.subr.mxu1 %v590_v29  ;;  %729 = vmatprep.mubr.f32.mxu1 %v297_v14  ;;  %v566_v14 = vld [vmem:[#allocation5 + $0x8] sm:$0xff]  ;;  %v625_v29 = vld [vmem:[#allocation5 + $0x1e0] sm:$0xff] }
  0xc0   : > { %748 = vmatprep.subr.mxu0 %v654_v30  ;;  %926 = vmatprep.mubr.msk.f32.mxu0 %vm404_vm4, %v299_v15  ;;  %v630_v15 = vld [vmem:[#allocation5 + $0x208] sm:$0xff]  ;;  %v661_v30 = vld [vmem:[#allocation5 + $0x300] sm:$0xff] }
  0xc1   : > { %672 = vmatpush1.msra.mxu1 %v589_v31  ;;  %749 = vmatpush1.msra.mxu0 %v653_v32  ;;  %v662_v28 = vld [vmem:[#allocation5 + $0x308] sm:$0xff]  ;;  %v624_v31 = vld [vmem:[#allocation5 + $0x1d8] sm:$0xff]  ;;  %v623_v32 = vld [vmem:[#allocation5 + $0x1d0] sm:$0xff] }
  0xc2   : > { %673 = vmatprep.subr.mxu1 %v588_v33  ;;  %750 = vmatprep.subr.mxu0 %v652_v34  ;;  %v622_v33 = vld [vmem:[#allocation5 + $0x1c8] sm:$0xff]  ;;  %v621_v34 = vld [vmem:[#allocation5 + $0x1c0] sm:$0xff] }
  0xc3   : > { %674 = vmatpush1.msra.mxu1 %v587_v35  ;;  %751 = vmatpush1.msra.mxu0 %v651_v36  ;;  %v620_v35 = vld [vmem:[#allocation5 + $0x1b8] sm:$0xff]  ;;  %v619_v36 = vld [vmem:[#allocation5 + $0x1b0] sm:$0xff] }
  0xc4   : > { %675 = vmatprep.subr.mxu1 %v586_v37  ;;  %752 = vmatprep.subr.mxu0 %v650_v38  ;;  %v618_v37 = vld [vmem:[#allocation5 + $0x1a8] sm:$0xff]  ;;  %v617_v38 = vld [vmem:[#allocation5 + $0x1a0] sm:$0xff] }
  0xc5   : > { %676 = vmatpush1.msra.mxu1 %v585_v39  ;;  %753 = vmatpush1.msra.mxu0 %v649_v40  ;;  %v616_v39 = vld [vmem:[#allocation5 + $0x198] sm:$0xff]  ;;  %v615_v40 = vld [vmem:[#allocation5 + $0x190] sm:$0xff] }
  0xc6   : > { %677 = vmatprep.subr.mxu1 %v584_v41  ;;  %754 = vmatprep.subr.mxu0 %v648_v42  ;;  %v613_v41 = vld [vmem:[#allocation5 + $0x180] sm:$0xff]  ;;  %v612_v42 = vld [vmem:[#allocation5 + $0x178] sm:$0xff] }
  0xc7   : > { %678 = vmatpush1.msra.mxu1 %v583_v43  ;;  %755 = vmatpush1.msra.mxu0 %v647_v44  ;;  %v610_v43 = vld [vmem:[#allocation5 + $0x168] sm:$0xff]  ;;  %v609_v44 = vld [vmem:[#allocation5 + $0x160] sm:$0xff] }
  0xc8   : > { %679 = vmatprep.subr.mxu1 %v582_v45  ;;  %756 = vmatprep.subr.mxu0 %v646_v46  ;;  %v608_v45 = vld [vmem:[#allocation5 + $0x158] sm:$0xff]  ;;  %v606_v46 = vld [vmem:[#allocation5 + $0x148] sm:$0xff] }
  0xc9   : > { %680 = vmatpush1.msra.mxu1 %v581_v47  ;;  %757 = vmatpush1.msra.mxu0 %v645_v48  ;;  %v605_v47 = vld [vmem:[#allocation5 + $0x140] sm:$0xff]  ;;  %v604_v48 = vld [vmem:[#allocation5 + $0x138] sm:$0xff] }
  0xca   : > { %681 = vmatprep.subr.mxu1 %v580_v49  ;;  %758 = vmatprep.subr.mxu0 %v644_v50  ;;  %v603_v49 = vld [vmem:[#allocation5 + $0x130] sm:$0xff]  ;;  %v602_v50 = vld [vmem:[#allocation5 + $0x128] sm:$0xff] }
  0xcb   : > { %682 = vmatpush1.msra.mxu1 %v579_v51  ;;  %759 = vmatpush1.msra.mxu0 %v643_v52  ;;  %v601_v51 = vld [vmem:[#allocation5 + $0x120] sm:$0xff]  ;;  %v600_v52 = vld [vmem:[#allocation5 + $0x118] sm:$0xff] }
  0xcc   : > { %683 = vmatprep.subr.mxu1 %v578_v53  ;;  %760 = vmatprep.subr.mxu0 %v642_v54  ;;  %v599_v53 = vld [vmem:[#allocation5 + $0x110] sm:$0xff]  ;;  %v598_v54 = vld [vmem:[#allocation5 + $0x108] sm:$0xff] }
  0xcd   : > { %684 = vmatpush1.msra.mxu1 %v577_v55  ;;  %761 = vmatpush1.msra.mxu0 %v641_v56  ;;  %v597_v55 = vld [vmem:[#allocation5 + $0x100] sm:$0xff] }
  0xce   : > { %685 = vmatprep.subr.mxu1 %v576_v57  ;;  %762 = vmatprep.subr.mxu0 %v640_v58 }
  0xcf   : > { %686 = vmatpush1.msra.mxu1 %v575_v59  ;;  %763 = vmatpush1.msra.mxu0 %v639_v60 }
  0xd0   : > { %687 = vmatprep.subr.mxu1 %v574_v61  ;;  %764 = vmatprep.subr.mxu0 %v638_v62 }
  0xd1   : > { %688 = vmatpush1.msra.mxu1 %v573_v63  ;;  %765 = vmatpush1.msra.mxu0 %v637_v0 }
  0xd2   : > { %689 = vmatprep.subr.mxu1 %v572_v1  ;;  %766 = vmatprep.subr.mxu0 %v636_v2 }
  0xd3   : > { %690 = vmatpush1.msra.mxu1 %v571_v3  ;;  %767 = vmatpush1.msra.mxu0 %v635_v5 }
  0xd4   : > { %691 = vmatprep.subr.mxu1 %v570_v6  ;;  %768 = vmatprep.subr.mxu0 %v634_v7 }
  0xd5   : > { %692 = vmatpush1.msra.mxu1 %v569_v8  ;;  %769 = vmatpush1.msra.mxu0 %v633_v9 }
  0xd6   : > { %693 = vmatprep.subr.mxu1 %v568_v10  ;;  %770 = vmatprep.subr.mxu0 %v632_v11 }
  0xd7   : > { %694 = vmatpush1.msra.mxu1 %v567_v12  ;;  %771 = vmatpush1.msra.mxu0 %v631_v13 }
  0xd8   : > { %695 = vmatprep.subr.mxu1 %v566_v14  ;;  %772 = vmatprep.subr.mxu0 %v630_v15 }
  0xd9   : > { %696 = vmatpush1.msra.mxu1 %v565_v18  ;;  %773 = vmatpush1.msra.mxu0 %v629_v19 }
  0xda   : > { %697 = vmatprep.subr.mxu1 %v628_v4  ;;  %802 = vmatprep.subr.mxu0 %v664_v20 }
  0xdb   : > { %698 = vmatpush2.msra.mxu1 %v627_v21  ;;  %803 = vmatpush2.msra.mxu0 %v663_v24 }
  0xdc   : > { %699 = vmatprep.subr.mxu1 %v626_v27  ;;  %804 = vmatprep.subr.mxu0 %v662_v28 }
  0xdd   : > { %700 = vmatpush2.msra.mxu1 %v625_v29  ;;  %805 = vmatpush2.msra.mxu0 %v661_v30 }
  0xde   : > { %701 = vmatprep.subr.mxu1 %v624_v31  ;;  %807 = vmatmul.mubr.f32.vlgmr.msra.gmra.mxu0 %v1172_v17  ;;  %v614_v17 = vld [vmem:[#allocation5 + $0x188] sm:$0xff] }
  0xdf   : > { %702 = vmatpush2.msra.mxu1 %v623_v32  ;;  %927 = vmatprep.mubr.msk.f32.mxu0 %vm404_vm4, %v1178_v23  ;;  %v611_v23 = vld [vmem:[#allocation5 + $0x170] sm:$0xff] }
  0xe0   : > { %703 = vmatprep.subr.mxu1 %v622_v33 }
  0xe1   : > { %704 = vmatpush2.msra.mxu1 %v621_v34 }
  0xe2   : > { %705 = vmatprep.subr.mxu1 %v620_v35  ;;  %813 = vmatmul.mubr.f32.gmra.mxu0 %v1182_v26  ;;  %v607_v26 = vld [vmem:[#allocation5 + $0x150] sm:$0xff] }
  0xe3   : > { %706 = vmatpush2.msra.mxu1 %v619_v36 }
  0xe4   : > { %707 = vmatprep.subr.mxu1 %v618_v37 }
  0xe5   : > { %708 = vmatpush2.msra.mxu1 %v617_v38 }
  0xe6   : > { %709 = vmatprep.subr.mxu1 %v616_v39 }
  0xe7   : > { %710 = vmatpush2.msra.mxu1 %v615_v40 }
  0xe8   : > { %711 = vmatprep.subr.mxu1 %v614_v17 }
  0xe9   : > { %712 = vmatpush2.msra.mxu1 %v613_v41 }
  0xea   : > { %713 = vmatprep.subr.mxu1 %v612_v42 }
  0xeb   : > { %714 = vmatpush2.msra.mxu1 %v611_v23 }
  0xec   : > { %715 = vmatprep.subr.mxu1 %v610_v43 }
  0xed   : > { %716 = vmatpush2.msra.mxu1 %v609_v44 }
  0xee   : > { %717 = vmatprep.subr.mxu1 %v608_v45 }
  0xef   : > { %718 = vmatpush2.msra.mxu1 %v607_v26 }
  0xf0   : > { %719 = vmatprep.subr.mxu1 %v606_v46 }
  0xf1   : > { %720 = vmatpush2.msra.mxu1 %v605_v47 }
  0xf2   : > { %721 = vmatprep.subr.mxu1 %v604_v48 }
  0xf3   : > { %722 = vmatpush2.msra.mxu1 %v603_v49 }
  0xf4   : > { %723 = vmatprep.subr.mxu1 %v602_v50 }
  0xf5   : > { %724 = vmatpush2.msra.mxu1 %v601_v51 }
  0xf6   : > { %725 = vmatprep.subr.mxu1 %v600_v52 }
  0xf7   : > { %726 = vmatpush2.msra.mxu1 %v599_v53 }
  0xf8   : > { %727 = vmatprep.subr.mxu1 %v598_v54 }
  0xf9   : > { %728 = vmatpush2.msra.mxu1 %v597_v55 }
  0xfa   : > { %730 = vmatmul.mubr.f32.vlgmr.msra.gmra.mxu1 %v1169_v16 }
  0xfb   : > { %735 = vmatprep.mubr.f32.mxu1 %v1176_v22 }
  0xfe   : > { %736 = vmatmul.mubr.f32.gmra.mxu1 %v1180_v25 }
 0x177   : > { %v477_v56 = vpop.f32.mrf.mxu0  ;;  %v554_v58 = vpop.f32.mrf.mxu1 }
 0x178   : > { %v555_v1 = vadd.f32 %v554_v58, %v477_v56 }
 0x179   : > { %v479_v57 = vpop.f32.mrf.mxu0  ;;  %v556_v60 = vpop.f32.mrf.mxu1 }
 0x17a   : > { %v557_v2 = vadd.f32 %v556_v60, %v479_v57  ;;  %v819_v22 = vmul.f32 %v555_v1, %v555_v1 }
 0x17c   : > { %v820_v10 = vmul.f32 %v557_v2, %v557_v2 }
 0x17d   : > { %v483_v59 = vpop.f32.mrf.mxu0  ;;  %v560_v62 = vpop.f32.mrf.mxu1 }
 0x17e   : > { %v561_v8 = vadd.f32 %v560_v62, %v483_v59 }
 0x17f   : > { %v485_v61 = vpop.f32.mrf.mxu0  ;;  %v562_v0 = vpop.f32.mrf.mxu1 }
 0x180   : > { %v563_v12 = vadd.f32 %v562_v0, %v485_v61  ;;  %v821_v4 = vmul.f32 %v561_v8, %v561_v8 }
 0x182   : > { %v822_v27 = vmul.f32 %v563_v12, %v563_v12 }
 0x19e   : > { %v808_v63 = vpop.f32.mrf.mxu0 }
 0x1a0   : > { %v810_v3 = vpop.f32.mrf.mxu0 }
 0x1a2   : > { %v814_v6 = vpop.f32.mrf.mxu0 }
 0x1a4   : > { %v816_v18 = vpop.f32.mrf.mxu0 }
 0x1ba   : > { %v731_v5 = vpop.f32.mrf.mxu1 }
 0x1bb   : > { %v809_v16 = vadd.f32 %v808_v63, %v731_v5 }
 0x1bc   : > { %v733_v7 = vpop.f32.mrf.mxu1 }
 0x1bd   : > { %v823_v25 = vmul.f32 %v809_v16, %v809_v16  ;;  %v811_v9 = vadd.f32 %v810_v3, %v733_v7 }
 0x1be   : > { %v737_v11 = vpop.f32.mrf.mxu1 }
 0x1bf   : > { %v827_v13 = vadd.f32 %v823_v25, %v819_v22  ;;  %v824_v14 = vmul.f32 %v811_v9, %v811_v9  ;;  %v815_v15 = vadd.f32 %v814_v6, %v737_v11 }
 0x1c0   : > { %v739_v19 = vpop.f32.mrf.mxu1 }
 0x1c1   : > { %831 = vst [vmem:[%s197_s11] sm:$0xff] %v827_v13  ;;  %v828_v20 = vadd.f32 %v824_v14, %v820_v10  ;;  %v825_v21 = vmul.f32 %v815_v15, %v815_v15  ;;  %v817_v24 = vadd.f32 %v816_v18, %v739_v19 }
 0x1c3   : > { %832 = vst [vmem:[%s197_s11 + $0x8] sm:$0xff] %v828_v20  ;;  %v829_v28 = vadd.f32 %v825_v21, %v821_v4  ;;  %v826_v29 = vmul.f32 %v817_v24, %v817_v24 }
 0x1c5   : > { %833 = vst [vmem:[%s197_s11 + $0x10] sm:$0x7] %v829_v28  ;;  %v830_v30 = vadd.f32 %v826_v29, %v822_v27 }
 0x1c7   : > { %834 = vst [vmem:[%s197_s11 + $0x18] sm:$0x7] %v830_v30 }
 0x1c8 PF: > { %s15_s12 = sadd.s32 1, %s1031_s12  }
 0x1c9   : > { %p12_p2 = scmp.ge.s32.totalorder %s15_s12, 4  }
 0x1cb   :  { %14 = sbr.rel (!%p12_p2) target bundleno = 2 (0x2), region = 81 }
 0x1d0   :  { %856 = vsyncpa [#allocation4], 1 }
 0x1d1   :  { %858 = vsyncpa [#allocation4 + $0x1], 1 }
 0x1d2   :  { %859 = vsyncpa [#allocation6], 1 }

</bundles_post_ra>
